<compile_context>
chip_gen: v5e
topology: v5e:2x2
jax: 0.10.0
libtpu: 0.0.40
codegen_flags: <defaults>
</compile_context>

<pallas_src>
import functools

import jax
import jax.numpy as jnp
import numpy as np
from jax.experimental import pallas as pl
from jax.experimental.pallas import tpu as pltpu


def _adversary_kernel(x_ref, w1b1_ref, w23_ref, b23_ref, w4b4_ref, o_ref):
    H = w23_ref.shape[-1]

    x = x_ref[...]                                                  # (1, bm)

    # Layer 1 (K = 1): VPU broadcast multiply + bias + ReLU, no MXU push.
    w1 = w1b1_ref[:, 0:1]                                           # (H, 1)
    b1 = w1b1_ref[:, 1:2]                                           # (H, 1)
    h = jnp.maximum(w1 * x + b1, 0.0)                               # (H, bm)

    # Hidden layers: (H, H) @ (H, bm) on the MXU with f32 accumulation.
    h = jnp.maximum(
        jnp.dot(w23_ref[0], h, preferred_element_type=jnp.float32)
        + b23_ref[:, 0:1], 0.0)
    h = jnp.maximum(
        jnp.dot(w23_ref[1], h, preferred_element_type=jnp.float32)
        + b23_ref[:, 1:2], 0.0)

    # Output layer: (S, H) @ (H, bm) -> (S, bm); lane-dense stores.
    out = (jnp.dot(w4b4_ref[:, 0:H], h, preferred_element_type=jnp.float32)
           + w4b4_ref[:, H:H + 1])
    o_ref[...] = out.astype(o_ref.dtype)


def prepare_adversary_params(params):
    """One-time repack to feature-major, fused operands (call outside jit).

    params: w1..w4 as (in, out), b1..b4 as (1, out).
    """
    w1t, b1t = params["w1"].T, params["b1"].T        # (H, 1), (H, 1)
    w2t, b2t = params["w2"].T, params["b2"].T        # (H, H), (H, 1)
    w3t, b3t = params["w3"].T, params["b3"].T        # (H, H), (H, 1)
    w4t, b4t = params["w4"].T, params["b4"].T        # (S, H), (S, 1)
    return {
        "w1b1": jnp.concatenate([w1t, b1t], axis=1),   # (H, 2)
        "w23": jnp.stack([w2t, w3t], axis=0),          # (2, H, H)
        "b23": jnp.concatenate([b2t, b3t], axis=1),    # (H, 2)
        "w4b4": jnp.concatenate([w4t, b4t], axis=1),   # (S, H + 1)
    }


@functools.partial(jax.jit, static_argnames=("block_m",))
def adversary_forward(x, prepared, *, block_m=2048):
    """x: (B, 1) float32. prepared: output of prepare_adversary_params."""
    B = x.shape[0]
    S = prepared["w4b4"].shape[0]

    # Lane-align the requested batch tile, then fit it to this batch:
    #   * never tile larger than the (128-rounded) batch,
    #   * when multiple blocks are needed, re-balance so blocks are equal and
    #     padding is minimal (fewest, largest, balanced steps).
    block_m = max(128, (block_m // 128) * 128)
    B128 = -(-B // 128) * 128
    bm = min(block_m, B128)
    num_blocks = -(-B128 // bm)
    bm = -(-(B128 // 128) // num_blocks) * 128
    B_pad = num_blocks * bm

    # Batch on the lane axis; pad so every block is exact (padded cols sliced
    # off afterwards).  x is (1, B) f32 so this pad is negligible traffic.
    xt = x.reshape(1, B)
    if B_pad != B:
        xt = jnp.pad(xt, ((0, 0), (0, B_pad - B)))

    def full(arr):
        nd = arr.ndim
        return pl.BlockSpec(arr.shape, lambda i, _n=nd: (0,) * _n)

    out_t = pl.pallas_call(
        _adversary_kernel,
        out_shape=jax.ShapeDtypeStruct((S, B_pad), x.dtype),
        grid_spec=pltpu.PrefetchScalarGridSpec(
            num_scalar_prefetch=0,
            grid=(num_blocks,),
            in_specs=[
                pl.BlockSpec((1, bm), lambda i: (0, i)),   # x tile
                full(prepared["w1b1"]),
                full(prepared["w23"]),
                full(prepared["b23"]),
                full(prepared["w4b4"]),
            ],
            out_specs=pl.BlockSpec((S, bm), lambda i: (0, i)),
        ),
        compiler_params=pltpu.CompilerParams(
            dimension_semantics=("parallel",)),
    )(xt, prepared["w1b1"], prepared["w23"], prepared["b23"],
      prepared["w4b4"])

    # Back to (B, n_sensitive), dropping batch padding.  (For very large B a
    # consumer could take the feature-major (S, B_pad) slab directly and fuse
    # this slice/transpose downstream.)
    return out_t[:, :B].T


def init_adversary_params(key, n_sensitive, n_hidden=32):
    """Deterministic synthetic init (torch-Linear-like uniform bounds)."""
    dims = [(1, n_hidden), (n_hidden, n_hidden),
            (n_hidden, n_hidden), (n_hidden, n_sensitive)]
    params = {}
    for idx, (fan_in, fan_out) in enumerate(dims, start=1):
        key, kw, kb = jax.random.split(key, 3)
        bound = 1.0 / np.sqrt(fan_in)
        params[f"w{idx}"] = jax.random.uniform(
            kw, (fan_in, fan_out), jnp.float32, -bound, bound)
        params[f"b{idx}"] = jax.random.uniform(
            kb, (1, fan_out), jnp.float32, -bound, bound)
    return params


def adversary_reference(x, params):
    h = jnp.maximum(x @ params["w1"] + params["b1"], 0.0)
    h = jnp.maximum(h @ params["w2"] + params["b2"], 0.0)
    h = jnp.maximum(h @ params["w3"] + params["b3"], 0.0)
    return h @ params["w4"] + params["b4"]


if __name__ == "__main__":
    key = jax.random.PRNGKey(0)
    k_x, k_p, k_x2, k_x3 = jax.random.split(key, 4)

    batch, n_sensitive, n_hidden = 16, 2, 32
    params = init_adversary_params(k_p, n_sensitive, n_hidden)
    prepared = prepare_adversary_params(params)   # one-time repack (hoisted)

    # Small batch: single 128-wide block.
    x = jax.random.normal(k_x, (batch, 1), jnp.float32)
    out = jax.block_until_ready(adversary_forward(x, prepared))
    ref = adversary_reference(x, params)
    np.testing.assert_allclose(np.asarray(out), np.asarray(ref),
                               rtol=1e-5, atol=1e-5)

    # Non-multiple-of-128 batch: still a single (padded) block, no forced split.
    x_mid = jax.random.normal(k_x2, (300, 1), jnp.float32)
    out_mid = jax.block_until_ready(adversary_forward(x_mid, prepared))
    ref_mid = adversary_reference(x_mid, params)
    np.testing.assert_allclose(np.asarray(out_mid), np.asarray(ref_mid),
                               rtol=1e-5, atol=1e-5)

    # Larger batch: exercises the multi-block, balanced-tile path.
    x_big = jax.random.normal(k_x3, (3000, 1), jnp.float32)
    out_big = jax.block_until_ready(adversary_forward(x_big, prepared))
    ref_big = adversary_reference(x_big, params)
    np.testing.assert_allclose(np.asarray(out_big), np.asarray(ref_big),
                               rtol=1e-5, atol=1e-5)

    print("KERNEL_OK")
</pallas_src>

<mosaic_0001>
module attributes {stable_mosaic.version = 11 : i64} {
  func.func @_adversary_kernel(%arg0: i32, %arg1: memref<1x128xf32, #tpu.memory_space<vmem>>, %arg2: memref<32x2xf32, #tpu.memory_space<vmem>>, %arg3: memref<2x32x32xf32, #tpu.memory_space<vmem>>, %arg4: memref<32x2xf32, #tpu.memory_space<vmem>>, %arg5: memref<2x33xf32, #tpu.memory_space<vmem>>, %arg6: memref<2x128xf32, #tpu.memory_space<vmem>>) attributes {dimension_semantics = [#tpu.dimension_semantics<parallel>], iteration_bounds = array<i64: 1>, scalar_prefetch = 0 : i64, scratch_operands = 0 : i64, tpu.core_type = #tpu.core_type<tc>, window_params = [{transform_indices = @transform_0, window_bounds = array<i64: 1, 128>}, {pipeline_mode = #tpu.pipeline_mode<synchronous>, transform_indices = @transform_1, window_bounds = array<i64: 32, 2>}, {pipeline_mode = #tpu.pipeline_mode<synchronous>, transform_indices = @transform_2, window_bounds = array<i64: 2, 32, 32>}, {pipeline_mode = #tpu.pipeline_mode<synchronous>, transform_indices = @transform_3, window_bounds = array<i64: 32, 2>}, {pipeline_mode = #tpu.pipeline_mode<synchronous>, transform_indices = @transform_4, window_bounds = array<i64: 2, 33>}, {transform_indices = @transform_5, window_bounds = array<i64: 2, 128>}]} {
    %c0 = arith.constant 0 : index
    %c0_0 = arith.constant 0 : index
    %0 = vector.load %arg1[%c0, %c0_0] : memref<1x128xf32, #tpu.memory_space<vmem>>, vector<1x128xf32>
    %c0_1 = arith.constant 0 : index
    %c0_2 = arith.constant 0 : index
    %1 = vector.load %arg2[%c0_1, %c0_2] : memref<32x2xf32, #tpu.memory_space<vmem>>, vector<32x1xf32>
    %c0_3 = arith.constant 0 : index
    %c1 = arith.constant 1 : index
    %2 = vector.load %arg2[%c0_3, %c1] : memref<32x2xf32, #tpu.memory_space<vmem>>, vector<32x1xf32>
    %3 = vector.broadcast %1 : vector<32x1xf32> to vector<32x128xf32>
    %4 = vector.broadcast %0 : vector<1x128xf32> to vector<32x128xf32>
    %5 = arith.mulf %3, %4 : vector<32x128xf32>
    %6 = vector.broadcast %2 : vector<32x1xf32> to vector<32x128xf32>
    %7 = arith.addf %5, %6 : vector<32x128xf32>
    %cst = arith.constant 0.000000e+00 : f32
    %8 = vector.broadcast %cst : f32 to vector<32x128xf32>
    %9 = arith.maximumf %7, %8 : vector<32x128xf32>
    %c0_4 = arith.constant 0 : index
    %c0_5 = arith.constant 0 : index
    %c0_6 = arith.constant 0 : index
    %10 = vector.load %arg3[%c0_4, %c0_5, %c0_6] : memref<2x32x32xf32, #tpu.memory_space<vmem>>, vector<1x32x32xf32>
    %11 = vector.shape_cast %10 : vector<1x32x32xf32> to vector<32x32xf32>
    %cst_7 = arith.constant dense<0.000000e+00> : vector<32x128xf32>
    %12 = tpu.matmul %11, %9, %cst_7 {dimension_numbers = #tpu.dot_dimension_numbers<[1], [0], [0], [1], [0, 0, 1, 1], [], []>} : vector<32x32xf32>, vector<32x128xf32>, vector<32x128xf32> -> vector<32x128xf32>
    %c0_8 = arith.constant 0 : index
    %c0_9 = arith.constant 0 : index
    %13 = vector.load %arg4[%c0_8, %c0_9] : memref<32x2xf32, #tpu.memory_space<vmem>>, vector<32x1xf32>
    %14 = vector.broadcast %13 : vector<32x1xf32> to vector<32x128xf32>
    %15 = arith.addf %12, %14 : vector<32x128xf32>
    %cst_10 = arith.constant 0.000000e+00 : f32
    %16 = vector.broadcast %cst_10 : f32 to vector<32x128xf32>
    %17 = arith.maximumf %15, %16 : vector<32x128xf32>
    %c1_11 = arith.constant 1 : index
    %c0_12 = arith.constant 0 : index
    %c0_13 = arith.constant 0 : index
    %18 = vector.load %arg3[%c1_11, %c0_12, %c0_13] : memref<2x32x32xf32, #tpu.memory_space<vmem>>, vector<1x32x32xf32>
    %19 = vector.shape_cast %18 : vector<1x32x32xf32> to vector<32x32xf32>
    %cst_14 = arith.constant dense<0.000000e+00> : vector<32x128xf32>
    %20 = tpu.matmul %19, %17, %cst_14 {dimension_numbers = #tpu.dot_dimension_numbers<[1], [0], [0], [1], [0, 0, 1, 1], [], []>} : vector<32x32xf32>, vector<32x128xf32>, vector<32x128xf32> -> vector<32x128xf32>
    %c0_15 = arith.constant 0 : index
    %c1_16 = arith.constant 1 : index
    %21 = vector.load %arg4[%c0_15, %c1_16] : memref<32x2xf32, #tpu.memory_space<vmem>>, vector<32x1xf32>
    %22 = vector.broadcast %21 : vector<32x1xf32> to vector<32x128xf32>
    %23 = arith.addf %20, %22 : vector<32x128xf32>
    %cst_17 = arith.constant 0.000000e+00 : f32
    %24 = vector.broadcast %cst_17 : f32 to vector<32x128xf32>
    %25 = arith.maximumf %23, %24 : vector<32x128xf32>
    %c0_18 = arith.constant 0 : index
    %c0_19 = arith.constant 0 : index
    %26 = vector.load %arg5[%c0_18, %c0_19] : memref<2x33xf32, #tpu.memory_space<vmem>>, vector<2x32xf32>
    %cst_20 = arith.constant dense<0.000000e+00> : vector<2x128xf32>
    %27 = tpu.matmul %26, %25, %cst_20 {dimension_numbers = #tpu.dot_dimension_numbers<[1], [0], [0], [1], [0, 0, 1, 1], [], []>} : vector<2x32xf32>, vector<32x128xf32>, vector<2x128xf32> -> vector<2x128xf32>
    %c0_21 = arith.constant 0 : index
    %c32 = arith.constant 32 : index
    %28 = vector.load %arg5[%c0_21, %c32] : memref<2x33xf32, #tpu.memory_space<vmem>>, vector<2x1xf32>
    %29 = vector.broadcast %28 : vector<2x1xf32> to vector<2x128xf32>
    %30 = arith.addf %27, %29 : vector<2x128xf32>
    %c0_22 = arith.constant 0 : index
    %c0_23 = arith.constant 0 : index
    %31 = vector.load %arg6[%c0_22, %c0_23] : memref<2x128xf32, #tpu.memory_space<vmem>>, vector<2x128xf32>
    tpu.vector_store %arg6[%c0_22, %c0_23], %30 {strides = array<i32>} : memref<2x128xf32, #tpu.memory_space<vmem>>, vector<2x128xf32>,
    return
  }
  func.func @transform_0(%arg0: i32) -> (i32, i32) {
    %c0_i32 = arith.constant 0 : i32
    %c0_i32_0 = arith.constant 0 : i32
    return %c0_i32, %arg0 : i32, i32
  }
  func.func @transform_1(%arg0: i32) -> (i32, i32) {
    %c0_i32 = arith.constant 0 : i32
    %c0_i32_0 = arith.constant 0 : i32
    %c0_i32_1 = arith.constant 0 : i32
    return %c0_i32, %c0_i32_0 : i32, i32
  }
  func.func @transform_2(%arg0: i32) -> (i32, i32, i32) {
    %c0_i32 = arith.constant 0 : i32
    %c0_i32_0 = arith.constant 0 : i32
    %c0_i32_1 = arith.constant 0 : i32
    %c0_i32_2 = arith.constant 0 : i32
    return %c0_i32, %c0_i32_0, %c0_i32_1 : i32, i32, i32
  }
  func.func @transform_3(%arg0: i32) -> (i32, i32) {
    %c0_i32 = arith.constant 0 : i32
    %c0_i32_0 = arith.constant 0 : i32
    %c0_i32_1 = arith.constant 0 : i32
    return %c0_i32, %c0_i32_0 : i32, i32
  }
  func.func @transform_4(%arg0: i32) -> (i32, i32) {
    %c0_i32 = arith.constant 0 : i32
    %c0_i32_0 = arith.constant 0 : i32
    %c0_i32_1 = arith.constant 0 : i32
    return %c0_i32, %c0_i32_0 : i32, i32
  }
  func.func @transform_5(%arg0: i32) -> (i32, i32) {
    %c0_i32 = arith.constant 0 : i32
    %c0_i32_0 = arith.constant 0 : i32
    return %c0_i32, %arg0 : i32, i32
  }
}

</mosaic_0001>

<bundles_post_ra>
// kernel: adversary_forward.1
= control target key start
LH: loop header
LB: loop body
LE: loop exit
PB: predicated region body
PF: predicated region fallthrough
CT: control target
= control target key end

     0   :  { %v286_v0 = vmov 0   ;;  %v287_v1 = vmov 1   ;;  %vm104_vm0 = vcmask 261120   ;;  %v288_v56 = vmov 32   ;;  %s385_s1 = inlined_call_operand.vmem [shape: f32[32,2], index: 1, kind: input, shape index: {}]   ;;  %s386_s0 = inlined_call_operand.vmem [shape: f32[1,128], index: 0, kind: input, shape index: {}]   ;;  %s387_s3 = inlined_call_operand.vmem [shape: f32[32,2], index: 3, kind: input, shape index: {}]   ;;  %s388_s2 = inlined_call_operand.vmem [shape: f32[2,32,32], index: 2, kind: input, shape index: {}]   ;;  %s389_s4 = inlined_call_operand.vmem [shape: f32[2,33], index: 4, kind: input, shape index: {}]   ;;  %s390_s5 = inlined_call_operand.vmem [shape: f32[2,128], index: 5, kind: output, shape index: {}]  }
   0x1   :  { %273 = vset.pattern.permute.xlu0 %v286_v0  ;;  %274 = vset.pattern.permute.xlu1 %v287_v1  ;;  %v24_v2 = vld [vmem:[%s385_s1 + $0x18] sm:$0xff]  ;;  %v23_v3 = vld [vmem:[%s385_s1 + $0x10] sm:$0xff]  ;;  %v22_v4 = vld [vmem:[%s385_s1 + $0x8] sm:$0xff] }
   0x2   :  { %42 = vperm.xlu0 %273, %v24_v2   ;;  %65 = vperm.xlu1 %274, %v24_v2   ;;  %v21_v5 = vld [vmem:[%s385_s1] sm:$0xff]  ;;  %v83_v6 = vld [vmem:[%s387_s3 + $0x18] sm:$0xff]  ;;  %v81_v7 = vld [vmem:[%s387_s3 + $0x8] sm:$0xff] }
   0x3   :  { %276 = vset.pattern.permute.xlu2 %v287_v1  ;;  %v285_v8 = vld [vmem:[%s386_s0] ss:$0 sm:$0xff]  ;;  %v82_v18 = vld [vmem:[%s387_s3 + $0x10] sm:$0xff]  ;;  %v77_v31 = vld [vmem:[%s388_s2 + $0x8] sm:$0xff] }
   0x4   :  { %61 = vperm.xlu2 %276, %v23_v3   ;;  %v80_v19 = vld [vmem:[%s387_s3] sm:$0xff]  ;;  %v78_v33 = vld [vmem:[%s388_s2 + $0x10] sm:$0xff]  ;;  %v79_v34 = vld [vmem:[%s388_s2 + $0x18] sm:$0xff] }
   0x5   :  { %v76_v32 = vld [vmem:[%s388_s2] sm:$0xff]  ;;  %v254_v51 = vld [vmem:[%s388_s2 + $0x28] sm:$0xff]  ;;  %v255_v53 = vld [vmem:[%s388_s2 + $0x30] sm:$0xff] }
   0x6   :  { %v253_v52 = vld [vmem:[%s388_s2 + $0x20] sm:$0xff]  ;;  %v256_v54 = vld [vmem:[%s388_s2 + $0x38] sm:$0xff] }
   0x7   :  { %v216_v55 = vld [vmem:[%s389_s4] sm:$0x3] }
   0xa   :  { %37 = vperm.xlu0 %273, %v23_v3   ;;  %275 = vset.pattern.permute.xlu1 %v286_v0 }
   0xb   :  { %32 = vperm.xlu1 %275, %v22_v4  }
   0xc   :  { %277 = vset.pattern.permute.xlu2 %v286_v0 }
   0xd   :  { %27 = vperm.xlu2 %277, %v21_v5  }
  0x12   :  { %278 = vset.pattern.permute.xlu0 %v287_v1 }
  0x13   :  { %57 = vperm.xlu0 %278, %v22_v4   ;;  %279 = vset.pattern.permute.xlu1 %v287_v1 }
  0x14   :  { %53 = vperm.xlu1 %279, %v21_v5  }
  0x15   :  { %101 = vperm.xlu2 %277, %v83_v6  }
  0x1b   :  { %281 = vset.pattern.permute.xlu0 %v286_v0 }
  0x1c   :  { %280 = vset.pattern.permute.xlu1 %v286_v0  ;;  %86 = vperm.xlu0 %281, %v80_v19  }
  0x1d   :  { %91 = vperm.xlu2 %277, %v81_v7   ;;  %96 = vperm.xlu1 %280, %v82_v18  }
  0x24   :  { %284 = vset.pattern.permute.xlu0 %v288_v56 }
  0x25   :  { %283 = vset.pattern.permute.xlu2 %v287_v1  ;;  %282 = vset.pattern.permute.xlu1 %v287_v1 }
  0x26   :  { %164 = vperm.xlu2 %283, %v82_v18   ;;  %168 = vperm.xlu1 %282, %v83_v6  }
  0x27   :  { %219 = vperm.xlu0 %284, %v216_v55  }
  0x2e   :  { %156 = vperm.xlu2 %283, %v80_v19   ;;  %160 = vperm.xlu1 %282, %v81_v7  }
  0x5e   :  { %v62_v13 = vpop.permute.xlu2 %61 }
  0x67   :  { %v28_v22 = vpop.permute.xlu2 %27 }
  0x68   :  { %v48_v23 = vmul.f32 %v285_v8, %v28_v22 }
  0x6f   :  { %v102_v36 = vpop.permute.xlu2 %101 }
  0x74   :  { %v43_v9 = vpop.permute.xlu0 %42  ;;  %v66_v10 = vpop.permute.xlu1 %65 }
  0x75   :  { %v51_v11 = vmul.f32 %v285_v8, %v43_v9 }
  0x77   :  { %v71_v12 = vadd.f32 %v66_v10, %v51_v11  ;;  %v92_v44 = vpop.permute.xlu2 %91 }
  0x79   :  { %v75_v14 = vmax.f32 %v71_v12, 0.0 }
  0x7b   :  { %129 = vmatpush.msra.mxu0 %v75_v14  ;;  %262 = vmatpush.msra.mxu3 %v75_v14 }
  0x7c   :  { %v38_v15 = vpop.permute.xlu0 %37 }
  0x7d   :  { %v50_v16 = vmul.f32 %v285_v8, %v38_v15  ;;  %v33_v17 = vpop.permute.xlu1 %32 }
  0x7e   :  { %v49_v24 = vmul.f32 %v285_v8, %v33_v17 }
  0x7f   :  { %v70_v20 = vadd.f32 %v62_v13, %v50_v16 }
  0x80   :  { %v165_v59 = vpop.permute.xlu2 %164 }
  0x81   :  { %v74_v21 = vmax.f32 %v70_v20, 0.0 }
  0x83   :  { %130 = vmatpush.msra.mxu0 %v74_v21  ;;  %263 = vmatpush.msra.mxu3 %v74_v21 }
  0x85   :  { %v58_v25 = vpop.permute.xlu0 %57 }
  0x86   :  { %v69_v26 = vadd.f32 %v58_v25, %v49_v24  ;;  %v54_v27 = vpop.permute.xlu1 %53 }
  0x87   :  { %v68_v28 = vadd.f32 %v54_v27, %v48_v23 }
  0x88   :  { %v73_v29 = vmax.f32 %v69_v26, 0.0  ;;  %v157_v1 = vpop.permute.xlu2 %156 }
  0x89   :  { %v72_v30 = vmax.f32 %v68_v28, 0.0 }
  0x8a   :  { %131 = vmatpush.msra.mxu0 %v73_v29  ;;  %264 = vmatpush.msra.mxu3 %v73_v29 }
  0x8c   :  { %132 = vmatpush.msra.mxu0 %v72_v30  ;;  %265 = vmatpush.msra.mxu3 %v72_v30 }
  0x8d   :  { %250 = vmatmul.msk.f32.vlgmr.msra.gmra.mxu3 %vm104_vm0, %v77_v31  ;;  %249 = vmatmul.msk.f32.vlgmr.msra.gmra.mxu0 %vm104_vm0, %v76_v32 }
  0x8e   :  { %v87_v39 = vpop.permute.xlu0 %86 }
  0x8f   :  { %v97_v38 = vpop.permute.xlu1 %96 }
  0x95   :  { %251 = vmatmul.msk.f32.gmra.mxu3 %vm104_vm0, %v78_v33 }
  0x98   :  { %v169_v58 = vpop.permute.xlu1 %168 }
  0x99   :  { %v220_v9 = vpop.permute.xlu0 %219 }
  0x9d   :  { %252 = vmatmul.msk.f32.gmra.mxu3 %vm104_vm0, %v79_v34 }
  0xa0   :  { %v161_v61 = vpop.permute.xlu1 %160 }
 0x10a   :  { %v134_v41 = vpop.f32.mrf.mxu0 }
 0x10b   :  { %v135_v47 = vadd.f32 %v134_v41, %v87_v39 }
 0x10d   :  { %v146_v50 = vmax.f32 %v135_v47, 0.0 }
 0x110   :  { %v137_v35 = vpop.f32.mrf.mxu3 }
 0x111   :  { %v138_v45 = vadd.f32 %v137_v35, %v92_v44 }
 0x113   :  { %v147_v49 = vmax.f32 %v138_v45, 0.0 }
 0x118   :  { %v140_v37 = vpop.f32.mrf.mxu3 }
 0x119   :  { %v141_v42 = vadd.f32 %v140_v37, %v97_v38 }
 0x11b   :  { %v148_v48 = vmax.f32 %v141_v42, 0.0 }
 0x120   :  { %v143_v40 = vpop.f32.mrf.mxu3 }
 0x121   :  { %v144_v43 = vadd.f32 %v143_v40, %v102_v36 }
 0x123   :  { %v149_v46 = vmax.f32 %v144_v43, 0.0 }
 0x125   :  { %195 = vmatpush.msrb.mxu0 %v149_v46  ;;  %266 = vmatpush.msra.mxu1 %v149_v46 }
 0x127   :  { %196 = vmatpush.msrb.mxu0 %v148_v48  ;;  %267 = vmatpush.msra.mxu1 %v148_v48 }
 0x129   :  { %197 = vmatpush.msrb.mxu0 %v147_v49  ;;  %268 = vmatpush.msra.mxu1 %v147_v49 }
 0x12b   :  { %198 = vmatpush.msrb.mxu0 %v146_v50  ;;  %269 = vmatpush.msra.mxu1 %v146_v50 }
 0x12c   :  { %258 = vmatmul.msk.f32.vlgmr.msra.gmra.mxu1 %vm104_vm0, %v254_v51  ;;  %257 = vmatmul.msk.f32.vlgmr.msrb.gmra.mxu0 %vm104_vm0, %v253_v52 }
 0x134   :  { %259 = vmatmul.msk.f32.gmra.mxu1 %vm104_vm0, %v255_v53 }
 0x13c   :  { %260 = vmatmul.msk.f32.gmra.mxu1 %vm104_vm0, %v256_v54 }
 0x1a9   :  { %v203_v57 = vpop.f32.mrf.mxu1  ;;  %v200_v2 = vpop.f32.mrf.mxu0 }
 0x1aa   :  { %v204_v3 = vadd.f32 %v203_v57, %v161_v61  ;;  %v201_v6 = vadd.f32 %v200_v2, %v157_v1 }
 0x1ac   :  { %v213_v7 = vmax.f32 %v204_v3, 0.0  ;;  %v212_v8 = vmax.f32 %v201_v6, 0.0 }
 0x1b1   :  { %v206_v60 = vpop.f32.mrf.mxu1 }
 0x1b2   :  { %v207_v63 = vadd.f32 %v206_v60, %v165_v59 }
 0x1b4   :  { %v214_v5 = vmax.f32 %v207_v63, 0.0 }
 0x1b9   :  { %v209_v62 = vpop.f32.mrf.mxu1 }
 0x1ba   :  { %v210_v0 = vadd.f32 %v209_v62, %v169_v58 }
 0x1bc   :  { %v215_v4 = vmax.f32 %v210_v0, 0.0 }
 0x1be   :  { %236 = vmatpush.msra.mxu2 %v215_v4 }
 0x1c0   :  { %237 = vmatpush.msra.mxu2 %v214_v5 }
 0x1c2   :  { %238 = vmatpush.msra.mxu2 %v213_v7 }
 0x1c4   :  { %239 = vmatpush.msra.mxu2 %v212_v8 }
 0x1c5   :  { %261 = vmatmul.msk.f32.vlgmr.msra.gmra.mxu2 %vm104_vm0, %v216_v55 }
 0x248   :  { %v241_v10 = vpop.f32.mrf.mxu2 }
 0x249   :  { %v242_v11 = vadd.f32 %v241_v10, %v220_v9 }
 0x24b   :  { %244 = vst [vmem:[%s390_s5] sm:$0x3] %v242_v11 }

</bundles_post_ra>
